<compile_context>
chip_gen: v7x
topology: tpu7x:2x2x1
jax: 0.10.0
libtpu: 0.0.40
codegen_flags: <defaults>
</compile_context>

<pallas_src>
import functools

import jax
import jax.numpy as jnp
from jax.experimental import pallas as pl


def gcndec_kernel(x_ref, adj_ref, w1_ref, b1_ref, w2_ref, b2_ref, o_ref, *, B, N):
    """Single invocation over the whole batch.

    x_ref:   (B*N, D)  node features, graphs stacked along rows
    adj_ref: (B*N, N)  per-graph normalized dense adjacency, stacked along rows
    w1_ref:  (D, H)    conv1 weight
    b1_ref:  (1, H)    conv1 bias
    w2_ref:  (H, D)    conv2 weight
    b2_ref:  (1, D)    conv2 bias
    o_ref:   (B*N, D)  output
    """
    # ---- conv1 neighborhood aggregation (reassociated): per-graph adj_b @ x_b ----
    ax = jnp.concatenate(
        [
            jnp.dot(
                adj_ref[b * N:(b + 1) * N, :],
                x_ref[b * N:(b + 1) * N, :],
                preferred_element_type=jnp.float32,
            )
            for b in range(B)
        ],
        axis=0,
    )  # (B*N, D)

    # ---- conv1 feature transform: one batch-flattened matmul ----
    h = jnp.dot(ax, w1_ref[...], preferred_element_type=jnp.float32) + b1_ref[...]  # (B*N, H)

    # ---- conv2 feature transform: one batch-flattened matmul ----
    hw = jnp.dot(h, w2_ref[...], preferred_element_type=jnp.float32)  # (B*N, D)

    # ---- conv2 neighborhood aggregation: per-graph adj_b @ hw_b, then bias ----
    h2 = jnp.concatenate(
        [
            jnp.dot(
                adj_ref[b * N:(b + 1) * N, :],
                hw[b * N:(b + 1) * N, :],
                preferred_element_type=jnp.float32,
            )
            for b in range(B)
        ],
        axis=0,
    ) + b2_ref[...]  # (B*N, D)

    # ---- F.relu ----
    o_ref[...] = jnp.maximum(h2, 0.0)


def gcndec_forward(x, adj, w1, b1, w2, b2):
    """Forward pass. Accepts a single graph (N,D)/(N,N) or a batch (B,N,D)/(B,N,N)."""
    squeeze = x.ndim == 2
    if squeeze:
        x, adj = x[None], adj[None]

    # x.to(torch.float32) semantics handled once here (no-op if already f32).
    x = x.astype(jnp.float32)
    adj = adj.astype(jnp.float32)

    B, N, D = x.shape
    H = w1.shape[1]

    # Contiguous (free) reshapes: stack graphs along rows -> everything stays 2D.
    x2 = x.reshape(B * N, D)
    adj2 = adj.reshape(B * N, N)
    w1f = w1.astype(jnp.float32)
    w2f = w2.astype(jnp.float32)
    b1f = jnp.reshape(b1, (1, H)).astype(jnp.float32)
    b2f = jnp.reshape(b2, (1, D)).astype(jnp.float32)

    kernel = functools.partial(gcndec_kernel, B=B, N=N)

    out = pl.pallas_call(
        kernel,
        out_shape=jax.ShapeDtypeStruct((B * N, D), jnp.float32),
        grid=(1,),
        in_specs=[
            pl.BlockSpec((B * N, D), lambda i: (0, 0)),
            pl.BlockSpec((B * N, N), lambda i: (0, 0)),
            pl.BlockSpec((D, H), lambda i: (0, 0)),
            pl.BlockSpec((1, H), lambda i: (0, 0)),
            pl.BlockSpec((H, D), lambda i: (0, 0)),
            pl.BlockSpec((1, D), lambda i: (0, 0)),
        ],
        out_specs=pl.BlockSpec((B * N, D), lambda i: (0, 0)),
    )(x2, adj2, w1f, b1f, w2f, b2f)

    out = out.reshape(B, N, D)
    return out[0] if squeeze else out


def init_params(key, input_dim, hidden=32):
    k1, k2, k3, k4 = jax.random.split(key, 4)
    # Deterministic Glorot-ish init; shapes match GCNConv(input_dim,32)/(32,input_dim).
    w1 = jax.random.normal(k1, (input_dim, hidden), jnp.float32) * 0.1
    b1 = jax.random.normal(k2, (hidden,), jnp.float32) * 0.01
    w2 = jax.random.normal(k3, (hidden, input_dim), jnp.float32) * 0.1
    b2 = jax.random.normal(k4, (input_dim,), jnp.float32) * 0.01
    return w1, b1, w2, b2


def _reference(x, adj, w1, b1, w2, b2):
    # Plain-JAX reference in the original PyTorch association order, batched.
    h1 = jnp.einsum('bij,bjk->bik', adj,
                    jnp.einsum('bij,jk->bik', x, w1)) + b1[None, None, :]
    h2 = jnp.einsum('bij,bjk->bik', adj,
                    jnp.einsum('bij,jk->bik', h1, w2)) + b2[None, None, :]
    return jnp.maximum(h2, 0.0)


if __name__ == "__main__":
    B = 4           # batch of graphs, fused into one kernel invocation
    N = 16          # nodes per graph
    input_dim = 8   # feature dimension of the gcndec module

    key = jax.random.PRNGKey(0)
    kx, ka, kp = jax.random.split(key, 3)

    x = jax.random.normal(kx, (B, N, input_dim), jnp.float32)

    # Deterministic symmetric adjacency with self-loops and symmetric
    # normalization D^-1/2 (A+I) D^-1/2 (standard GCN preprocessing), per graph.
    a_raw = (jax.random.uniform(ka, (B, N, N)) > 0.7).astype(jnp.float32)
    a_sym = jnp.maximum(a_raw, jnp.swapaxes(a_raw, -1, -2)) + jnp.eye(N, dtype=jnp.float32)[None]
    deg = jnp.sum(a_sym, axis=-1)
    d_inv_sqrt = 1.0 / jnp.sqrt(deg)
    adj = a_sym * d_inv_sqrt[:, :, None] * d_inv_sqrt[:, None, :]

    w1, b1, w2, b2 = init_params(kp, input_dim)

    # Batched forward (one grid step for the whole batch).
    out = gcndec_forward(x, adj, w1, b1, w2, b2)
    jax.block_until_ready(out)

    ref = _reference(x, adj, w1, b1, w2, b2)
    assert out.shape == (B, N, input_dim)
    assert jnp.allclose(out, ref, atol=1e-4, rtol=1e-4)

    # Single-graph path (matches the original module's call signature).
    out1 = gcndec_forward(x[0], adj[0], w1, b1, w2, b2)
    jax.block_until_ready(out1)
    assert out1.shape == (N, input_dim)
    assert jnp.allclose(out1, ref[0], atol=1e-4, rtol=1e-4)

    print("KERNEL_OK")
</pallas_src>

<mosaic_0001>
module attributes {stable_mosaic.version = 11 : i64} {
  func.func @gcndec_kernel(%arg0: i32, %arg1: memref<64x8xf32, #tpu.memory_space<vmem>>, %arg2: memref<64x16xf32, #tpu.memory_space<vmem>>, %arg3: memref<8x32xf32, #tpu.memory_space<vmem>>, %arg4: memref<1x32xf32, #tpu.memory_space<vmem>>, %arg5: memref<32x8xf32, #tpu.memory_space<vmem>>, %arg6: memref<1x8xf32, #tpu.memory_space<vmem>>, %arg7: memref<64x8xf32, #tpu.memory_space<vmem>>) attributes {dimension_semantics = [#tpu.dimension_semantics<arbitrary>], iteration_bounds = array<i64: 1>, scalar_prefetch = 0 : i64, scratch_operands = 0 : i64, tpu.core_type = #tpu.core_type<tc>, window_params = [{pipeline_mode = #tpu.pipeline_mode<synchronous>, transform_indices = @transform_0, window_bounds = array<i64: 64, 8>}, {pipeline_mode = #tpu.pipeline_mode<synchronous>, transform_indices = @transform_1, window_bounds = array<i64: 64, 16>}, {pipeline_mode = #tpu.pipeline_mode<synchronous>, transform_indices = @transform_2, window_bounds = array<i64: 8, 32>}, {pipeline_mode = #tpu.pipeline_mode<synchronous>, transform_indices = @transform_3, window_bounds = array<i64: 1, 32>}, {pipeline_mode = #tpu.pipeline_mode<synchronous>, transform_indices = @transform_4, window_bounds = array<i64: 32, 8>}, {pipeline_mode = #tpu.pipeline_mode<synchronous>, transform_indices = @transform_5, window_bounds = array<i64: 1, 8>}, {pipeline_mode = #tpu.pipeline_mode<synchronous>, transform_indices = @transform_6, window_bounds = array<i64: 64, 8>}]} {
    %c0 = arith.constant 0 : index
    %c0_0 = arith.constant 0 : index
    %0 = vector.load %arg2[%c0, %c0_0] : memref<64x16xf32, #tpu.memory_space<vmem>>, vector<16x16xf32>
    %c0_1 = arith.constant 0 : index
    %c0_2 = arith.constant 0 : index
    %1 = vector.load %arg1[%c0_1, %c0_2] : memref<64x8xf32, #tpu.memory_space<vmem>>, vector<16x8xf32>
    %cst = arith.constant dense<0.000000e+00> : vector<16x8xf32>
    %2 = tpu.matmul %0, %1, %cst {dimension_numbers = #tpu.dot_dimension_numbers<[1], [0], [0], [1], [0, 0, 1, 1], [], []>} : vector<16x16xf32>, vector<16x8xf32>, vector<16x8xf32> -> vector<16x8xf32>
    %c16 = arith.constant 16 : index
    %c0_3 = arith.constant 0 : index
    %3 = vector.load %arg2[%c16, %c0_3] : memref<64x16xf32, #tpu.memory_space<vmem>>, vector<16x16xf32>
    %c16_4 = arith.constant 16 : index
    %c0_5 = arith.constant 0 : index
    %4 = vector.load %arg1[%c16_4, %c0_5] : memref<64x8xf32, #tpu.memory_space<vmem>>, vector<16x8xf32>
    %cst_6 = arith.constant dense<0.000000e+00> : vector<16x8xf32>
    %5 = tpu.matmul %3, %4, %cst_6 {dimension_numbers = #tpu.dot_dimension_numbers<[1], [0], [0], [1], [0, 0, 1, 1], [], []>} : vector<16x16xf32>, vector<16x8xf32>, vector<16x8xf32> -> vector<16x8xf32>
    %c32 = arith.constant 32 : index
    %c0_7 = arith.constant 0 : index
    %6 = vector.load %arg2[%c32, %c0_7] : memref<64x16xf32, #tpu.memory_space<vmem>>, vector<16x16xf32>
    %c32_8 = arith.constant 32 : index
    %c0_9 = arith.constant 0 : index
    %7 = vector.load %arg1[%c32_8, %c0_9] : memref<64x8xf32, #tpu.memory_space<vmem>>, vector<16x8xf32>
    %cst_10 = arith.constant dense<0.000000e+00> : vector<16x8xf32>
    %8 = tpu.matmul %6, %7, %cst_10 {dimension_numbers = #tpu.dot_dimension_numbers<[1], [0], [0], [1], [0, 0, 1, 1], [], []>} : vector<16x16xf32>, vector<16x8xf32>, vector<16x8xf32> -> vector<16x8xf32>
    %c48 = arith.constant 48 : index
    %c0_11 = arith.constant 0 : index
    %9 = vector.load %arg2[%c48, %c0_11] : memref<64x16xf32, #tpu.memory_space<vmem>>, vector<16x16xf32>
    %c48_12 = arith.constant 48 : index
    %c0_13 = arith.constant 0 : index
    %10 = vector.load %arg1[%c48_12, %c0_13] : memref<64x8xf32, #tpu.memory_space<vmem>>, vector<16x8xf32>
    %cst_14 = arith.constant dense<0.000000e+00> : vector<16x8xf32>
    %11 = tpu.matmul %9, %10, %cst_14 {dimension_numbers = #tpu.dot_dimension_numbers<[1], [0], [0], [1], [0, 0, 1, 1], [], []>} : vector<16x16xf32>, vector<16x8xf32>, vector<16x8xf32> -> vector<16x8xf32>
    %12 = tpu.concatenate %2, %5, %8, %11 in 0 : vector<16x8xf32>, vector<16x8xf32>, vector<16x8xf32>, vector<16x8xf32> -> vector<64x8xf32>
    %c0_15 = arith.constant 0 : index
    %c0_16 = arith.constant 0 : index
    %13 = vector.load %arg3[%c0_15, %c0_16] : memref<8x32xf32, #tpu.memory_space<vmem>>, vector<8x32xf32>
    %cst_17 = arith.constant dense<0.000000e+00> : vector<64x32xf32>
    %14 = tpu.matmul %12, %13, %cst_17 {dimension_numbers = #tpu.dot_dimension_numbers<[1], [0], [0], [1], [0, 0, 1, 1], [], []>} : vector<64x8xf32>, vector<8x32xf32>, vector<64x32xf32> -> vector<64x32xf32>
    %c0_18 = arith.constant 0 : index
    %c0_19 = arith.constant 0 : index
    %15 = vector.load %arg4[%c0_18, %c0_19] : memref<1x32xf32, #tpu.memory_space<vmem>>, vector<1x32xf32>
    %16 = vector.broadcast %15 : vector<1x32xf32> to vector<64x32xf32>
    %17 = arith.addf %14, %16 : vector<64x32xf32>
    %c0_20 = arith.constant 0 : index
    %c0_21 = arith.constant 0 : index
    %18 = vector.load %arg5[%c0_20, %c0_21] : memref<32x8xf32, #tpu.memory_space<vmem>>, vector<32x8xf32>
    %cst_22 = arith.constant dense<0.000000e+00> : vector<64x8xf32>
    %19 = tpu.matmul %17, %18, %cst_22 {dimension_numbers = #tpu.dot_dimension_numbers<[1], [0], [0], [1], [0, 0, 1, 1], [], []>} : vector<64x32xf32>, vector<32x8xf32>, vector<64x8xf32> -> vector<64x8xf32>
    %c0_23 = arith.constant 0 : index
    %c0_24 = arith.constant 0 : index
    %20 = vector.load %arg2[%c0_23, %c0_24] : memref<64x16xf32, #tpu.memory_space<vmem>>, vector<16x16xf32>
    %21 = vector.extract_strided_slice %19 {offsets = [0, 0], sizes = [16, 8], strides = [1, 1]} : vector<64x8xf32> to vector<16x8xf32>
    %cst_25 = arith.constant dense<0.000000e+00> : vector<16x8xf32>
    %22 = tpu.matmul %20, %21, %cst_25 {dimension_numbers = #tpu.dot_dimension_numbers<[1], [0], [0], [1], [0, 0, 1, 1], [], []>} : vector<16x16xf32>, vector<16x8xf32>, vector<16x8xf32> -> vector<16x8xf32>
    %c16_26 = arith.constant 16 : index
    %c0_27 = arith.constant 0 : index
    %23 = vector.load %arg2[%c16_26, %c0_27] : memref<64x16xf32, #tpu.memory_space<vmem>>, vector<16x16xf32>
    %24 = vector.extract_strided_slice %19 {offsets = [16, 0], sizes = [16, 8], strides = [1, 1]} : vector<64x8xf32> to vector<16x8xf32>
    %cst_28 = arith.constant dense<0.000000e+00> : vector<16x8xf32>
    %25 = tpu.matmul %23, %24, %cst_28 {dimension_numbers = #tpu.dot_dimension_numbers<[1], [0], [0], [1], [0, 0, 1, 1], [], []>} : vector<16x16xf32>, vector<16x8xf32>, vector<16x8xf32> -> vector<16x8xf32>
    %c32_29 = arith.constant 32 : index
    %c0_30 = arith.constant 0 : index
    %26 = vector.load %arg2[%c32_29, %c0_30] : memref<64x16xf32, #tpu.memory_space<vmem>>, vector<16x16xf32>
    %27 = vector.extract_strided_slice %19 {offsets = [32, 0], sizes = [16, 8], strides = [1, 1]} : vector<64x8xf32> to vector<16x8xf32>
    %cst_31 = arith.constant dense<0.000000e+00> : vector<16x8xf32>
    %28 = tpu.matmul %26, %27, %cst_31 {dimension_numbers = #tpu.dot_dimension_numbers<[1], [0], [0], [1], [0, 0, 1, 1], [], []>} : vector<16x16xf32>, vector<16x8xf32>, vector<16x8xf32> -> vector<16x8xf32>
    %c48_32 = arith.constant 48 : index
    %c0_33 = arith.constant 0 : index
    %29 = vector.load %arg2[%c48_32, %c0_33] : memref<64x16xf32, #tpu.memory_space<vmem>>, vector<16x16xf32>
    %30 = vector.extract_strided_slice %19 {offsets = [48, 0], sizes = [16, 8], strides = [1, 1]} : vector<64x8xf32> to vector<16x8xf32>
    %cst_34 = arith.constant dense<0.000000e+00> : vector<16x8xf32>
    %31 = tpu.matmul %29, %30, %cst_34 {dimension_numbers = #tpu.dot_dimension_numbers<[1], [0], [0], [1], [0, 0, 1, 1], [], []>} : vector<16x16xf32>, vector<16x8xf32>, vector<16x8xf32> -> vector<16x8xf32>
    %32 = tpu.concatenate %22, %25, %28, %31 in 0 : vector<16x8xf32>, vector<16x8xf32>, vector<16x8xf32>, vector<16x8xf32> -> vector<64x8xf32>
    %c0_35 = arith.constant 0 : index
    %c0_36 = arith.constant 0 : index
    %33 = vector.load %arg6[%c0_35, %c0_36] : memref<1x8xf32, #tpu.memory_space<vmem>>, vector<1x8xf32>
    %34 = vector.broadcast %33 : vector<1x8xf32> to vector<64x8xf32>
    %35 = arith.addf %32, %34 : vector<64x8xf32>
    %cst_37 = arith.constant 0.000000e+00 : f32
    %36 = vector.broadcast %cst_37 : f32 to vector<64x8xf32>
    %37 = arith.maximumf %35, %36 : vector<64x8xf32>
    %c0_38 = arith.constant 0 : index
    %c0_39 = arith.constant 0 : index
    %38 = vector.load %arg7[%c0_38, %c0_39] : memref<64x8xf32, #tpu.memory_space<vmem>>, vector<64x8xf32>
    tpu.vector_store %arg7[%c0_38, %c0_39], %37 {strides = array<i32>} : memref<64x8xf32, #tpu.memory_space<vmem>>, vector<64x8xf32>,
    return
  }
  func.func @transform_0(%arg0: i32) -> (i32, i32) {
    %c0_i32 = arith.constant 0 : i32
    %c0_i32_0 = arith.constant 0 : i32
    %c0_i32_1 = arith.constant 0 : i32
    return %c0_i32, %c0_i32_0 : i32, i32
  }
  func.func @transform_1(%arg0: i32) -> (i32, i32) {
    %c0_i32 = arith.constant 0 : i32
    %c0_i32_0 = arith.constant 0 : i32
    %c0_i32_1 = arith.constant 0 : i32
    return %c0_i32, %c0_i32_0 : i32, i32
  }
  func.func @transform_2(%arg0: i32) -> (i32, i32) {
    %c0_i32 = arith.constant 0 : i32
    %c0_i32_0 = arith.constant 0 : i32
    %c0_i32_1 = arith.constant 0 : i32
    return %c0_i32, %c0_i32_0 : i32, i32
  }
  func.func @transform_3(%arg0: i32) -> (i32, i32) {
    %c0_i32 = arith.constant 0 : i32
    %c0_i32_0 = arith.constant 0 : i32
    %c0_i32_1 = arith.constant 0 : i32
    return %c0_i32, %c0_i32_0 : i32, i32
  }
  func.func @transform_4(%arg0: i32) -> (i32, i32) {
    %c0_i32 = arith.constant 0 : i32
    %c0_i32_0 = arith.constant 0 : i32
    %c0_i32_1 = arith.constant 0 : i32
    return %c0_i32, %c0_i32_0 : i32, i32
  }
  func.func @transform_5(%arg0: i32) -> (i32, i32) {
    %c0_i32 = arith.constant 0 : i32
    %c0_i32_0 = arith.constant 0 : i32
    %c0_i32_1 = arith.constant 0 : i32
    return %c0_i32, %c0_i32_0 : i32, i32
  }
  func.func @transform_6(%arg0: i32) -> (i32, i32) {
    %c0_i32 = arith.constant 0 : i32
    %c0_i32_0 = arith.constant 0 : i32
    %c0_i32_1 = arith.constant 0 : i32
    return %c0_i32, %c0_i32_0 : i32, i32
  }
}

</mosaic_0001>

<bundles_post_ra>
// kernel: tpu_custom_call.1
= control target key start
LH: loop header
LB: loop body
LE: loop exit
PB: predicated region body
PF: predicated region fallthrough
CT: control target
= control target key end

     0   :  { %vm27_vm0 = vcmask 130048   ;;  %vm372_vm1 = vcmask 64512   ;;  %vm506_vm2 = vcmask 261120   ;;  %s1384_s0 = inlined_call_operand.vmem [shape: f32[64,8], index: 0, kind: input, shape index: {}]   ;;  %s1385_s1 = inlined_call_operand.vmem [shape: f32[64,16], index: 1, kind: input, shape index: {}]   ;;  %s1386_s2 = inlined_call_operand.vmem [shape: f32[8,32], index: 2, kind: input, shape index: {}]   ;;  %s1387_s4 = inlined_call_operand.vmem [shape: f32[32,8], index: 4, kind: input, shape index: {}]   ;;  %s1388_s3 = inlined_call_operand.vmem [shape: f32[1,32], index: 3, kind: input, shape index: {}]   ;;  %s1389_s5 = inlined_call_operand.vmem [shape: f32[1,8], index: 5, kind: input, shape index: {}]   ;;  %s1390_s6 = inlined_call_operand.vmem [shape: f32[64,8], index: 6, kind: output, shape index: {}]  }
   0x1   :  { %v25_v0 = vld [vmem:[%s1384_s0] sm:$0xff]  ;;  %v26_v1 = vld [vmem:[%s1384_s0 + $0x8] sm:$0xff]  ;;  %v111_v4 = vld [vmem:[%s1384_s0 + $0x10] sm:$0xff] }
   0x2   :  { %v23_v2 = vld [vmem:[%s1385_s1] sm:$0xff]  ;;  %v1148_v3 = vpack.c.bf16 %v26_v1, %v25_v0  ;;  %v112_v5 = vld [vmem:[%s1384_s0 + $0x18] sm:$0xff]  ;;  %v1242_v7 = vld [vmem:[%s1385_s1 + $0x10] sm:$0xff] }
   0x3   :  { %1062 = vmatprep.mubr.msk.f32.mxu0 %vm27_vm0, %v23_v2  ;;  %v1152_v6 = vpack.c.bf16 %v112_v5, %v111_v4  ;;  %v196_v8 = vld [vmem:[%s1384_s0 + $0x20] sm:$0xff]  ;;  %1069 = vmatprep.mubr.msk.f32.mxu1 %vm27_vm0, %v1242_v7  ;;  %v197_v9 = vld [vmem:[%s1384_s0 + $0x28] sm:$0xff]  ;;  %v281_v12 = vld [vmem:[%s1384_s0 + $0x30] sm:$0xff] }
   0x4   :  { %1149 = vmatprep.subr.bf16.mxu0 %v1148_v3  ;;  %v1255_v10 = vld [vmem:[%s1385_s1 + $0x8] sm:$0xff]  ;;  %v1156_v11 = vpack.c.bf16 %v197_v9, %v196_v8  ;;  %v282_v13 = vld [vmem:[%s1384_s0 + $0x38] sm:$0xff]  ;;  %v1271_v16 = vld [vmem:[%s1385_s1 + $0x20] sm:$0xff] }
   0x5   :  { %1151 = vmatpush3.bf16.msra.mxu0 %v1148_v3  ;;  %1153 = vmatprep.subr.bf16.mxu1 %v1152_v6  ;;  %v1266_v14 = vld [vmem:[%s1385_s1 + $0x18] sm:$0xff]  ;;  %v1160_v15 = vpack.c.bf16 %v282_v13, %v281_v12  ;;  %v1278_v17 = vld [vmem:[%s1385_s1 + $0x30] sm:$0xff]  ;;  %v1285_v18 = vld [vmem:[%s1385_s1 + $0x28] sm:$0xff] }
   0x6   :  { %1155 = vmatpush3.bf16.msra.mxu1 %v1152_v6  ;;  %1157 = vmatprep.subr.bf16.mxu0 %v1156_v11  ;;  %v1292_v19 = vld [vmem:[%s1385_s1 + $0x38] sm:$0xff]  ;;  %v364_v20 = vld [vmem:[%s1386_s2] sm:$0xff]  ;;  %v503_v22 = vld [vmem:[%s1387_s4 + $0x8] sm:$0xff] }
   0x7   :  { %1161 = vmatprep.subr.bf16.mxu1 %v1160_v15  ;;  %v502_v21 = vld [vmem:[%s1387_s4] sm:$0xff]  ;;  %v504_v32 = vld [vmem:[%s1387_s4 + $0x10] sm:$0xff]  ;;  %v505_v33 = vld [vmem:[%s1387_s4 + $0x18] sm:$0xff] }
   0x8   :  { %1063 = vmatmul.mubr.msk.f32.vlgmr.msra.gmra.mrb[0].mxu0 %vm27_vm0, %v1255_v10  ;;  %v1164_v23 = vpack.c.bf16 %v503_v22, %v502_v21  ;;  %v1168_v34 = vpack.c.bf16 %v505_v33, %v504_v32  ;;  %v979_v35 = vld [vmem:[%s1388_s3] ss:$0 sm:$0xff] }
   0x9   :  { %1070 = vmatmul.mubr.msk.f32.vlgmr.msra.gmra.mrb[0].mxu1 %vm27_vm0, %v1266_v14  ;;  %1159 = vmatpush3.bf16.msra.mxu0 %v1156_v11  ;;  %v1004_v0 = vld [vmem:[%s1389_s5] ss:$0 sm:$0xff] }
   0xa   :  { %1076 = vmatprep.mubr.msk.f32.mxu0 %vm27_vm0, %v1271_v16  ;;  %1163 = vmatpush3.bf16.msra.mxu1 %v1160_v15 }
   0xb   :  { %1083 = vmatprep.mubr.msk.f32.mxu1 %vm27_vm0, %v1278_v17  ;;  %1086 = vmatprep.subr.mxu0 %v364_v20 }
   0xc   :  { %1077 = vmatmul.mubr.msk.f32.vlgmr.msra.gmra.mrb[2].mxu0 %vm27_vm0, %v1285_v18  ;;  %1165 = vmatprep.subr.bf16.mxu1 %v1164_v23 }
   0xd   :  { %1084 = vmatmul.mubr.msk.f32.vlgmr.msra.gmra.mrb[2].mxu1 %vm27_vm0, %v1292_v19  ;;  %1087 = vmatpush3.msra.mxu0 %v364_v20 }
   0xe   :  { %1167 = vmatpush3.bf16.msra.mxu1 %v1164_v23 }
   0xf   :  { %1169 = vmatprep.subr.bf16.mxu1 %v1168_v34 }
  0x12   :  { %1171 = vmatpush3.bf16.msra.mxu1 %v1168_v34 }
  0xdb   :  { %v1064_v24 = vpop.f32.mrb[0].mxu0 }
  0xdc   :  { %v100_v25 = vpop.f32.mrb[1].mxu0  ;;  %v1071_v26 = vpop.f32.mrb[0].mxu1 }
  0xdd   :  { %1088 = vmatprep.mubr.msk.f32.mxu0 %vm372_vm1, %v100_v25  ;;  %v185_v27 = vpop.f32.mrb[1].mxu1 }
  0xde   :  { %1089 = vmatmul.mubr.msk.f32.vlgmr.msra.gmra.mrb[4].mxu0 %vm372_vm1, %v1064_v24 }
  0xdf   :  { %1091 = vmatprep.mubr.msk.f32.mxu0 %vm372_vm1, %v185_v27  ;;  %v1078_v28 = vpop.f32.mrb[2].mxu0 }
  0xe0   :  { %v270_v29 = vpop.f32.mrb[3].mxu0  ;;  %v1085_v30 = vpop.f32.mrb[2].mxu1 }
  0xe1   :  { %v355_v31 = vpop.f32.mrb[3].mxu1 }
  0xe2   :  { %1092 = vmatmul.mubr.msk.f32.gmra.mrb[6].mxu0 %vm372_vm1, %v1071_v26 }
  0xe3   :  { %1094 = vmatprep.mubr.msk.f32.mxu0 %vm372_vm1, %v270_v29 }
  0xe6   :  { %1095 = vmatmul.mubr.msk.f32.gmra.mrb[8].mxu0 %vm372_vm1, %v1078_v28 }
  0xe7   :  { %1097 = vmatprep.mubr.msk.f32.mxu0 %vm372_vm1, %v355_v31 }
  0xea   :  { %1098 = vmatmul.mubr.msk.f32.gmra.mrb[10].mxu0 %vm372_vm1, %v1085_v30 }
  0xeb   :  { %1124 = vmatprep.mubr.msk.f32.mxu0 %vm27_vm0, %v23_v2 }
 0x1b1   :  { %v1090_v36 = vpop.f32.mrb[4].mxu0 }
 0x1b2   :  { %v463_v37 = vpop.f32.mrb[5].mxu0  ;;  %v469_v39 = vadd.f32 %v1090_v36, %v979_v35 }
 0x1b3   :  { %v464_v38 = vadd.f32 %v979_v35, %v463_v37 }
 0x1b5   :  { %v1093_v40 = vpop.f32.mrb[6].mxu0  ;;  %1108 = vmatprep.mubr.msk.f32.mxu1 %vm506_vm2, %v464_v38 }
 0x1b6   :  { %v473_v41 = vpop.f32.mrb[7].mxu0  ;;  %1109 = vmatmul.mubr.msk.f32.vlgmr.msra.gmra.mrb[4].mxu1 %vm506_vm2, %v469_v39  ;;  %v479_v43 = vadd.f32 %v1093_v40, %v979_v35 }
 0x1b7   :  { %v474_v42 = vadd.f32 %v979_v35, %v473_v41 }
 0x1b9   :  { %v1096_v44 = vpop.f32.mrb[8].mxu0  ;;  %1111 = vmatprep.mubr.msk.f32.mxu1 %vm506_vm2, %v474_v42 }
 0x1ba   :  { %v483_v45 = vpop.f32.mrb[9].mxu0  ;;  %1112 = vmatmul.mubr.msk.f32.gmra.mrb[6].mxu1 %vm506_vm2, %v479_v43  ;;  %v489_v47 = vadd.f32 %v1096_v44, %v979_v35 }
 0x1bb   :  { %v484_v46 = vadd.f32 %v979_v35, %v483_v45 }
 0x1bd   :  { %1114 = vmatprep.mubr.msk.f32.mxu1 %vm506_vm2, %v484_v46  ;;  %v1099_v48 = vpop.f32.mrb[10].mxu0 }
 0x1be   :  { %1115 = vmatmul.mubr.msk.f32.gmra.mrb[8].mxu1 %vm506_vm2, %v489_v47  ;;  %v493_v49 = vpop.f32.mrb[11].mxu0  ;;  %v499_v51 = vadd.f32 %v1099_v48, %v979_v35 }
 0x1bf   :  { %v494_v50 = vadd.f32 %v979_v35, %v493_v49 }
 0x1c1   :  { %1117 = vmatprep.mubr.msk.f32.mxu1 %vm506_vm2, %v494_v50 }
 0x1c2   :  { %1118 = vmatmul.mubr.msk.f32.gmra.mrb[10].mxu1 %vm506_vm2, %v499_v51 }
 0x1c3   :  { %1138 = vmatprep.mubr.msk.f32.mxu1 %vm27_vm0, %v1271_v16 }
 0x289   :  { %v1110_v52 = vpop.f32.mrb[4].mxu1 }
 0x28a   :  { %v597_v53 = vpop.f32.mrb[5].mxu1 }
 0x28b   :  { %v1172_v54 = vpack.c.bf16 %v1110_v52, %v597_v53 }
 0x28d   :  { %v1113_v55 = vpop.f32.mrb[6].mxu1  ;;  %1173 = vmatprep.subr.bf16.mxu0 %v1172_v54 }
 0x28e   :  { %v607_v56 = vpop.f32.mrb[7].mxu1  ;;  %1175 = vmatpush3.bf16.msra.mxu0 %v1172_v54 }
 0x28f   :  { %v1176_v57 = vpack.c.bf16 %v1113_v55, %v607_v56 }
 0x291   :  { %v1116_v58 = vpop.f32.mrb[8].mxu1  ;;  %1177 = vmatprep.subr.bf16.mxu0 %v1176_v57  ;;  %1125 = vmatmul.mubr.msk.f32.vlgmr.msra.gmra.mrb[12].mxu0 %vm27_vm0, %v1255_v10 }
 0x292   :  { %v617_v59 = vpop.f32.mrb[9].mxu1  ;;  %1179 = vmatpush3.bf16.msra.mxu0 %v1176_v57  ;;  %1131 = vmatprep.mubr.msk.f32.mxu0 %vm27_vm0, %v1242_v7 }
 0x293   :  { %v1180_v60 = vpack.c.bf16 %v1116_v58, %v617_v59 }
 0x295   :  { %1181 = vmatprep.subr.bf16.mxu1 %v1180_v60  ;;  %v1119_v61 = vpop.f32.mrb[10].mxu1  ;;  %1132 = vmatmul.mubr.msk.f32.vlgmr.msra.gmra.mrb[14].mxu0 %vm27_vm0, %v1266_v14 }
 0x296   :  { %1183 = vmatpush3.bf16.msra.mxu1 %v1180_v60  ;;  %v627_v62 = vpop.f32.mrb[11].mxu1  ;;  %1145 = vmatprep.mubr.msk.f32.mxu0 %vm27_vm0, %v1278_v17 }
 0x297   :  { %v1184_v63 = vpack.c.bf16 %v1119_v61, %v627_v62 }
 0x299   :  { %1185 = vmatprep.subr.bf16.mxu0 %v1184_v63  ;;  %1139 = vmatmul.mubr.msk.f32.vlgmr.msra.gmra.mrb[12].mxu1 %vm27_vm0, %v1285_v18 }
 0x29a   :  { %1187 = vmatpush3.bf16.msra.mxu0 %v1184_v63 }
 0x29d   :  { %1146 = vmatmul.mubr.msk.f32.vlgmr.msra.gmra.mrb[16].mxu0 %vm27_vm0, %v1292_v19 }
 0x364   :  { %v1126_v1 = vpop.f32.mrb[12].mxu0 }
 0x365   :  { %v944_v2 = vadd.f32 %v1126_v1, %v1004_v0  ;;  %v702_v3 = vpop.f32.mrb[13].mxu0 }
 0x366   :  { %v943_v4 = vadd.f32 %v1004_v0, %v702_v3 }
 0x367   :  { %v952_v5 = vmax.f32 %v944_v2, 0.0 }
 0x368   :  { %v951_v6 = vmax.f32 %v943_v4, 0.0  ;;  %v1133_v7 = vpop.f32.mrb[14].mxu0 }
 0x369   :  { %960 = vst.msk [vmem:[%s1390_s6 + $0x8] sm:$0xff] %vm372_vm1, %v952_v5  ;;  %v946_v8 = vadd.f32 %v1133_v7, %v1004_v0  ;;  %v777_v9 = vpop.f32.mrb[15].mxu0 }
 0x36a   :  { %959 = vst.msk [vmem:[%s1390_s6] sm:$0xff] %vm372_vm1, %v951_v6  ;;  %v945_v10 = vadd.f32 %v1004_v0, %v777_v9 }
 0x36b   :  { %v954_v11 = vmax.f32 %v946_v8, 0.0 }
 0x36c   :  { %v953_v12 = vmax.f32 %v945_v10, 0.0  ;;  %v1140_v13 = vpop.f32.mrb[12].mxu1 }
 0x36d   :  { %962 = vst.msk [vmem:[%s1390_s6 + $0x18] sm:$0xff] %vm372_vm1, %v954_v11  ;;  %v948_v14 = vadd.f32 %v1140_v13, %v1004_v0  ;;  %v852_v15 = vpop.f32.mrb[13].mxu1 }
 0x36e   :  { %961 = vst.msk [vmem:[%s1390_s6 + $0x10] sm:$0xff] %vm372_vm1, %v953_v12  ;;  %v947_v16 = vadd.f32 %v1004_v0, %v852_v15 }
 0x36f   :  { %v956_v17 = vmax.f32 %v948_v14, 0.0 }
 0x370   :  { %v1147_v18 = vpop.f32.mrb[16].mxu0  ;;  %v955_v19 = vmax.f32 %v947_v16, 0.0 }
 0x371   :  { %964 = vst.msk [vmem:[%s1390_s6 + $0x28] sm:$0xff] %vm372_vm1, %v956_v17  ;;  %v950_v20 = vadd.f32 %v1147_v18, %v1004_v0  ;;  %v927_v21 = vpop.f32.mrb[17].mxu0 }
 0x372   :  { %963 = vst.msk [vmem:[%s1390_s6 + $0x20] sm:$0xff] %vm372_vm1, %v955_v19  ;;  %v949_v22 = vadd.f32 %v1004_v0, %v927_v21 }
 0x373   :  { %v958_v23 = vmax.f32 %v950_v20, 0.0 }
 0x374   :  { %v957_v24 = vmax.f32 %v949_v22, 0.0 }
 0x375   :  { %966 = vst.msk [vmem:[%s1390_s6 + $0x38] sm:$0xff] %vm372_vm1, %v958_v23 }
 0x376   :  { %965 = vst.msk [vmem:[%s1390_s6 + $0x30] sm:$0xff] %vm372_vm1, %v957_v24 }

</bundles_post_ra>
